<compile_context>
chip_gen: v7x
topology: tpu7x:2x2x1
jax: 0.10.0
libtpu: 0.0.40
codegen_flags: <defaults>
</compile_context>

<pallas_src>
import jax
import jax.numpy as jnp
from jax.experimental import pallas as pl
from jax.experimental.pallas import tpu as pltpu

NUM_CLASSES = 3
LANES = 128


def _loss_stats_kernel(logits_ref, tgt_ref,
                       inter_ref, psum_ref, tsum_ref, ce_ref,
                       ce_acc_ref):
    # grid = (batch, pixel_tile); outputs are per-batch partials, so every
    # batch (re)initializes at its first pixel tile and finalizes at its last.
    i = pl.program_id(1)
    n_i = pl.num_programs(1)

    @pl.when(i == 0)
    def _():
        inter_ref[...] = jnp.zeros_like(inter_ref)
        psum_ref[...] = jnp.zeros_like(psum_ref)
        tsum_ref[...] = jnp.zeros_like(tsum_ref)
        ce_acc_ref[...] = jnp.zeros_like(ce_acc_ref)

    logits = logits_ref[...].astype(jnp.float32)          # (C, S, 128)
    tgt = tgt_ref[...]                                     # (S, 128) int32
    C = logits.shape[0]

    valid = tgt >= 0                                       # padding has tgt == -1
    ch = jax.lax.broadcasted_iota(jnp.int32, logits.shape, 0)
    onehot = (ch == tgt[None, :, :]).astype(jnp.float32)   # (C, S, 128); 0 on padding

    # Per-class dice statistics: reduce the sublane axis first (cheap VPU
    # vreg adds + one XLU sublane reduce per class), then the 128 lanes.
    inter_p = jnp.sum(logits * onehot, axis=1)             # (C, 128)
    psum_p = jnp.sum(logits, axis=1)                       # (C, 128)
    tsum_p = jnp.sum(onehot, axis=1)                       # (C, 128)
    inter_ref[...] += jnp.sum(inter_p, axis=1, keepdims=True)   # (C, 1)
    psum_ref[...] += jnp.sum(psum_p, axis=1, keepdims=True)
    tsum_ref[...] += jnp.sum(tsum_p, axis=1, keepdims=True)

    # Per-pixel log-sum-exp; channel reductions are elementwise over the C
    # leading slabs (VPU).  logit[target] is not accumulated here: its global
    # sum equals sum(intersection), handled in the wrapper.
    m = jnp.max(logits, axis=0)                            # (S, 128)
    sexp = jnp.sum(jnp.exp(logits - m[None, :, :]), axis=0)
    lse = m + jnp.log(sexp)
    ce_acc_ref[...] += jnp.where(valid, lse, 0.0)          # lane-wide accumulator

    @pl.when(i == n_i - 1)
    def _():
        ce_ref[...] = jnp.sum(ce_acc_ref[...], axis=(0, 1), keepdims=True)


def soft_tuned_dice_bce_loss(inputs, targets, epoch, total_epochs,
                             epsilon=1e-6, target_pixels_per_step=32 * 1024):
    """inputs: (B, C, H, W) float logits, targets: (B, H, W) int class labels."""
    B, C, H, W = inputs.shape
    HW = H * W
    N = B * HW

    # --- tile-size selection (pixel axis -> (S, 128) with S a multiple of 8) ---
    S_total = -(-HW // LANES)                              # cdiv(HW, 128)
    S_target = max(8, target_pixels_per_step // LANES)     # default 256 sublanes
    num_tiles = max(1, -(-S_total // S_target))
    S_blk = -(-S_total // num_tiles)
    S_blk = ((S_blk + 7) // 8) * 8                         # sublane multiple of 8
    S_pad = S_blk * num_tiles
    HW_pad = S_pad * LANES

    # --- glue: free reshapes, pad remainder with zero logits / target = -1 ---
    logits = inputs.reshape(B, C, HW)
    tgt = targets.astype(jnp.int32).reshape(B, HW)
    if HW_pad != HW:
        pad = HW_pad - HW
        logits = jnp.pad(logits, ((0, 0), (0, 0), (0, pad)))
        tgt = jnp.pad(tgt, ((0, 0), (0, pad)), constant_values=-1)
    logits = logits.reshape(B, C, S_pad, LANES)
    tgt = tgt.reshape(B, S_pad, LANES)

    out_shapes = (
        jax.ShapeDtypeStruct((B, C, 1), jnp.float32),   # per-batch intersection
        jax.ShapeDtypeStruct((B, C, 1), jnp.float32),   # per-batch sum(pred)
        jax.ShapeDtypeStruct((B, C, 1), jnp.float32),   # per-batch sum(onehot)
        jax.ShapeDtypeStruct((B, 1, 1), jnp.float32),   # per-batch sum(logsumexp)
    )

    inter, psum, tsum, ce_lse = pl.pallas_call(
        _loss_stats_kernel,
        out_shape=out_shapes,
        grid_spec=pltpu.PrefetchScalarGridSpec(
            num_scalar_prefetch=0,
            grid=(B, num_tiles),
            in_specs=[
                pl.BlockSpec((None, C, S_blk, LANES), lambda b, i: (b, 0, i, 0)),
                pl.BlockSpec((None, S_blk, LANES), lambda b, i: (b, i, 0)),
            ],
            out_specs=[
                pl.BlockSpec((None, C, 1), lambda b, i: (b, 0, 0)),
                pl.BlockSpec((None, C, 1), lambda b, i: (b, 0, 0)),
                pl.BlockSpec((None, C, 1), lambda b, i: (b, 0, 0)),
                pl.BlockSpec((None, 1, 1), lambda b, i: (b, 0, 0)),
            ],
            scratch_shapes=[pltpu.VMEM((S_blk, LANES), jnp.float32)],
        ),
        compiler_params=pltpu.CompilerParams(
            dimension_semantics=("parallel", "arbitrary")),
    )(logits, tgt)

    # Combine per-batch partials (tiny host-side math).
    inter = jnp.sum(inter[:, :, 0], axis=0)                # (C,)
    psum = jnp.sum(psum[:, :, 0], axis=0)
    tsum = jnp.sum(tsum[:, :, 0], axis=0)
    ce_sum = jnp.sum(ce_lse) - jnp.sum(inter)              # sum(lse - logit[target])

    dice = (2.0 * inter + epsilon) / (psum + tsum + epsilon)
    nnz = jnp.count_nonzero(tsum)                          # classes present in targets
    mean_dice = jnp.sum(dice) / nnz
    dice_loss = 1.0 - mean_dice
    ce = ce_sum / N

    w_ce = (total_epochs - epoch) / total_epochs
    w_dice = epoch / total_epochs
    return w_ce * ce + w_dice * dice_loss


def _reference(inputs, targets, epoch, total_epochs, epsilon=1e-6):
    """Pure-JAX reference mirroring the PyTorch code, for sanity checking."""
    B, C, H, W = inputs.shape
    onehot = jax.nn.one_hot(targets, C, dtype=jnp.float32)          # (B, H, W, C)
    onehot = jnp.transpose(onehot, (0, 3, 1, 2))                    # (B, C, H, W)
    intersection = jnp.sum(inputs * onehot, axis=(0, 2, 3))
    union = jnp.sum(inputs, axis=(0, 2, 3)) + jnp.sum(onehot, axis=(0, 2, 3))
    dice = (2 * intersection + epsilon) / (union + epsilon)
    mean_dice = jnp.sum(dice) / jnp.count_nonzero(jnp.sum(onehot, axis=(0, 2, 3)))
    dice_loss = 1.0 - mean_dice
    logp = jax.nn.log_softmax(inputs, axis=1)
    ce = -jnp.mean(jnp.sum(jnp.transpose(onehot, (0, 2, 3, 1))
                           * jnp.transpose(logp, (0, 2, 3, 1)), axis=-1))
    return (total_epochs - epoch) / total_epochs * ce + epoch / total_epochs * dice_loss


if __name__ == "__main__":
    key = jax.random.PRNGKey(0)
    k1, k2 = jax.random.split(key)

    B, C, H, W = 2, NUM_CLASSES, 16, 16
    inputs = jax.random.normal(k1, (B, C, H, W), dtype=jnp.float32)   # logits
    targets = jax.random.randint(k2, (B, H, W), 0, C, dtype=jnp.int32)

    total_epochs = 10
    epoch = 3

    loss = soft_tuned_dice_bce_loss(inputs, targets, epoch, total_epochs)
    loss = jax.block_until_ready(loss)

    ref = _reference(inputs, targets, epoch, total_epochs)
    assert jnp.allclose(loss, ref, rtol=1e-5, atol=1e-5), (loss, ref)

    print("KERNEL_OK")
</pallas_src>

<mosaic_0001>
module attributes {stable_mosaic.version = 11 : i64} {
  func.func @_loss_stats_kernel(%arg0: i32, %arg1: i32, %arg2: memref<1x3x8x128xf32, #tpu.memory_space<vmem>>, %arg3: memref<1x8x128xi32, #tpu.memory_space<vmem>>, %arg4: memref<1x3x1xf32, #tpu.memory_space<vmem>>, %arg5: memref<1x3x1xf32, #tpu.memory_space<vmem>>, %arg6: memref<1x3x1xf32, #tpu.memory_space<vmem>>, %arg7: memref<1x1x1xf32, #tpu.memory_space<vmem>>, %arg8: memref<8x128xf32, #tpu.memory_space<vmem>>) attributes {dimension_semantics = [#tpu.dimension_semantics<parallel>, #tpu.dimension_semantics<arbitrary>], iteration_bounds = array<i64: 2, 1>, scalar_prefetch = 0 : i64, scratch_operands = 1 : i64, tpu.core_type = #tpu.core_type<tc>, window_params = [{transform_indices = @transform_0, window_bounds = array<i64: 1, 3, 8, 128>}, {transform_indices = @transform_1, window_bounds = array<i64: 1, 8, 128>}, {transform_indices = @transform_2, window_bounds = array<i64: 1, 3, 1>}, {transform_indices = @transform_3, window_bounds = array<i64: 1, 3, 1>}, {transform_indices = @transform_4, window_bounds = array<i64: 1, 3, 1>}, {transform_indices = @transform_5, window_bounds = array<i64: 1, 1, 1>}]} {
    %c0_i32 = arith.constant 0 : i32
    %0 = arith.cmpi eq, %arg1, %c0_i32 : i32
    %1 = arith.extui %0 : i1 to i32
    %c0_i32_0 = arith.constant 0 : i32
    %2 = arith.cmpi ne, %1, %c0_i32_0 : i32
    scf.if %2 {
      %cst_40 = arith.constant 0.000000e+00 : f32
      %59 = vector.broadcast %cst_40 : f32 to vector<3x1xf32>
      %c0_41 = arith.constant 0 : index
      %c0_42 = arith.constant 0 : index
      %c0_43 = arith.constant 0 : index
      %60 = vector.load %arg4[%c0_41, %c0_42, %c0_43] : memref<1x3x1xf32, #tpu.memory_space<vmem>>, vector<1x3x1xf32>
      %61 = vector.shape_cast %60 : vector<1x3x1xf32> to vector<3x1xf32>
      %62 = vector.shape_cast %59 : vector<3x1xf32> to vector<1x3x1xf32>
      tpu.vector_store %arg4[%c0_41, %c0_42, %c0_43], %62 {strides = array<i32>} : memref<1x3x1xf32, #tpu.memory_space<vmem>>, vector<1x3x1xf32>,
      %cst_44 = arith.constant 0.000000e+00 : f32
      %63 = vector.broadcast %cst_44 : f32 to vector<3x1xf32>
      %c0_45 = arith.constant 0 : index
      %c0_46 = arith.constant 0 : index
      %c0_47 = arith.constant 0 : index
      %64 = vector.load %arg5[%c0_45, %c0_46, %c0_47] : memref<1x3x1xf32, #tpu.memory_space<vmem>>, vector<1x3x1xf32>
      %65 = vector.shape_cast %64 : vector<1x3x1xf32> to vector<3x1xf32>
      %66 = vector.shape_cast %63 : vector<3x1xf32> to vector<1x3x1xf32>
      tpu.vector_store %arg5[%c0_45, %c0_46, %c0_47], %66 {strides = array<i32>} : memref<1x3x1xf32, #tpu.memory_space<vmem>>, vector<1x3x1xf32>,
      %cst_48 = arith.constant 0.000000e+00 : f32
      %67 = vector.broadcast %cst_48 : f32 to vector<3x1xf32>
      %c0_49 = arith.constant 0 : index
      %c0_50 = arith.constant 0 : index
      %c0_51 = arith.constant 0 : index
      %68 = vector.load %arg6[%c0_49, %c0_50, %c0_51] : memref<1x3x1xf32, #tpu.memory_space<vmem>>, vector<1x3x1xf32>
      %69 = vector.shape_cast %68 : vector<1x3x1xf32> to vector<3x1xf32>
      %70 = vector.shape_cast %67 : vector<3x1xf32> to vector<1x3x1xf32>
      tpu.vector_store %arg6[%c0_49, %c0_50, %c0_51], %70 {strides = array<i32>} : memref<1x3x1xf32, #tpu.memory_space<vmem>>, vector<1x3x1xf32>,
      %cst_52 = arith.constant 0.000000e+00 : f32
      %71 = vector.broadcast %cst_52 : f32 to vector<8x128xf32>
      %c0_53 = arith.constant 0 : index
      %c0_54 = arith.constant 0 : index
      %72 = vector.load %arg8[%c0_53, %c0_54] : memref<8x128xf32, #tpu.memory_space<vmem>>, vector<8x128xf32>
      tpu.vector_store %arg8[%c0_53, %c0_54], %71 {strides = array<i32>} : memref<8x128xf32, #tpu.memory_space<vmem>>, vector<8x128xf32>,
    } else {
    }
    %c0 = arith.constant 0 : index
    %c0_1 = arith.constant 0 : index
    %c0_2 = arith.constant 0 : index
    %c0_3 = arith.constant 0 : index
    %3 = vector.load %arg2[%c0, %c0_1, %c0_2, %c0_3] : memref<1x3x8x128xf32, #tpu.memory_space<vmem>>, vector<1x3x8x128xf32>
    %4 = vector.shape_cast %3 : vector<1x3x8x128xf32> to vector<3x8x128xf32>
    %c0_4 = arith.constant 0 : index
    %c0_5 = arith.constant 0 : index
    %c0_6 = arith.constant 0 : index
    %5 = vector.load %arg3[%c0_4, %c0_5, %c0_6] : memref<1x8x128xi32, #tpu.memory_space<vmem>>, vector<1x8x128xi32>
    %6 = vector.shape_cast %5 : vector<1x8x128xi32> to vector<8x128xi32>
    %c0_i32_7 = arith.constant 0 : i32
    %7 = vector.broadcast %c0_i32_7 : i32 to vector<8x128xi32>
    %8 = arith.cmpi sge, %6, %7 : vector<8x128xi32>
    %9 = tpu.iota {dimensions = array<i32: 0>} : vector<3x8x128xi32>
    %10 = vector.shape_cast %6 : vector<8x128xi32> to vector<1x8x128xi32>
    %11 = vector.broadcast %10 : vector<1x8x128xi32> to vector<3x8x128xi32>
    %12 = arith.cmpi eq, %9, %11 : vector<3x8x128xi32>
    %13 = arith.extui %12 : vector<3x8x128xi1> to vector<3x8x128xi32>
    %14 = arith.sitofp %13 : vector<3x8x128xi32> to vector<3x8x128xf32>
    %15 = arith.mulf %4, %14 : vector<3x8x128xf32>
    %cst = arith.constant dense<0.000000e+00> : vector<3x128xf32>
    %16 = vector.multi_reduction <add>, %15, %cst [1] : vector<3x8x128xf32> to vector<3x128xf32>
    %cst_8 = arith.constant dense<0.000000e+00> : vector<3x128xf32>
    %17 = vector.multi_reduction <add>, %4, %cst_8 [1] : vector<3x8x128xf32> to vector<3x128xf32>
    %cst_9 = arith.constant dense<0.000000e+00> : vector<3x128xf32>
    %18 = vector.multi_reduction <add>, %14, %cst_9 [1] : vector<3x8x128xf32> to vector<3x128xf32>
    %c0_10 = arith.constant 0 : index
    %c0_11 = arith.constant 0 : index
    %c0_12 = arith.constant 0 : index
    %19 = vector.load %arg4[%c0_10, %c0_11, %c0_12] : memref<1x3x1xf32, #tpu.memory_space<vmem>>, vector<1x3x1xf32>
    %20 = vector.shape_cast %19 : vector<1x3x1xf32> to vector<3x1xf32>
    %cst_13 = arith.constant dense<0.000000e+00> : vector<3xf32>
    %21 = vector.multi_reduction <add>, %16, %cst_13 [1] : vector<3x128xf32> to vector<3xf32>
    %22 = vector.shape_cast %21 : vector<3xf32> to vector<3x1xf32>
    %23 = arith.addf %20, %22 : vector<3x1xf32>
    %c0_14 = arith.constant 0 : index
    %c0_15 = arith.constant 0 : index
    %c0_16 = arith.constant 0 : index
    %24 = vector.load %arg4[%c0_14, %c0_15, %c0_16] : memref<1x3x1xf32, #tpu.memory_space<vmem>>, vector<1x3x1xf32>
    %25 = vector.shape_cast %24 : vector<1x3x1xf32> to vector<3x1xf32>
    %26 = vector.shape_cast %23 : vector<3x1xf32> to vector<1x3x1xf32>
    tpu.vector_store %arg4[%c0_14, %c0_15, %c0_16], %26 {strides = array<i32>} : memref<1x3x1xf32, #tpu.memory_space<vmem>>, vector<1x3x1xf32>,
    %c0_17 = arith.constant 0 : index
    %c0_18 = arith.constant 0 : index
    %c0_19 = arith.constant 0 : index
    %27 = vector.load %arg5[%c0_17, %c0_18, %c0_19] : memref<1x3x1xf32, #tpu.memory_space<vmem>>, vector<1x3x1xf32>
    %28 = vector.shape_cast %27 : vector<1x3x1xf32> to vector<3x1xf32>
    %cst_20 = arith.constant dense<0.000000e+00> : vector<3xf32>
    %29 = vector.multi_reduction <add>, %17, %cst_20 [1] : vector<3x128xf32> to vector<3xf32>
    %30 = vector.shape_cast %29 : vector<3xf32> to vector<3x1xf32>
    %31 = arith.addf %28, %30 : vector<3x1xf32>
    %c0_21 = arith.constant 0 : index
    %c0_22 = arith.constant 0 : index
    %c0_23 = arith.constant 0 : index
    %32 = vector.load %arg5[%c0_21, %c0_22, %c0_23] : memref<1x3x1xf32, #tpu.memory_space<vmem>>, vector<1x3x1xf32>
    %33 = vector.shape_cast %32 : vector<1x3x1xf32> to vector<3x1xf32>
    %34 = vector.shape_cast %31 : vector<3x1xf32> to vector<1x3x1xf32>
    tpu.vector_store %arg5[%c0_21, %c0_22, %c0_23], %34 {strides = array<i32>} : memref<1x3x1xf32, #tpu.memory_space<vmem>>, vector<1x3x1xf32>,
    %c0_24 = arith.constant 0 : index
    %c0_25 = arith.constant 0 : index
    %c0_26 = arith.constant 0 : index
    %35 = vector.load %arg6[%c0_24, %c0_25, %c0_26] : memref<1x3x1xf32, #tpu.memory_space<vmem>>, vector<1x3x1xf32>
    %36 = vector.shape_cast %35 : vector<1x3x1xf32> to vector<3x1xf32>
    %cst_27 = arith.constant dense<0.000000e+00> : vector<3xf32>
    %37 = vector.multi_reduction <add>, %18, %cst_27 [1] : vector<3x128xf32> to vector<3xf32>
    %38 = vector.shape_cast %37 : vector<3xf32> to vector<3x1xf32>
    %39 = arith.addf %36, %38 : vector<3x1xf32>
    %c0_28 = arith.constant 0 : index
    %c0_29 = arith.constant 0 : index
    %c0_30 = arith.constant 0 : index
    %40 = vector.load %arg6[%c0_28, %c0_29, %c0_30] : memref<1x3x1xf32, #tpu.memory_space<vmem>>, vector<1x3x1xf32>
    %41 = vector.shape_cast %40 : vector<1x3x1xf32> to vector<3x1xf32>
    %42 = vector.shape_cast %39 : vector<3x1xf32> to vector<1x3x1xf32>
    tpu.vector_store %arg6[%c0_28, %c0_29, %c0_30], %42 {strides = array<i32>} : memref<1x3x1xf32, #tpu.memory_space<vmem>>, vector<1x3x1xf32>,
    %cst_31 = arith.constant dense<0xFF800000> : vector<8x128xf32>
    %43 = vector.multi_reduction <maximumf>, %4, %cst_31 [0] : vector<3x8x128xf32> to vector<8x128xf32>
    %44 = vector.shape_cast %43 : vector<8x128xf32> to vector<1x8x128xf32>
    %45 = vector.broadcast %44 : vector<1x8x128xf32> to vector<3x8x128xf32>
    %46 = arith.subf %4, %45 : vector<3x8x128xf32>
    %47 = math.exp %46 : vector<3x8x128xf32>
    %cst_32 = arith.constant dense<0.000000e+00> : vector<8x128xf32>
    %48 = vector.multi_reduction <add>, %47, %cst_32 [0] : vector<3x8x128xf32> to vector<8x128xf32>
    %49 = math.log %48 : vector<8x128xf32>
    %50 = arith.addf %43, %49 : vector<8x128xf32>
    %c0_33 = arith.constant 0 : index
    %c0_34 = arith.constant 0 : index
    %51 = vector.load %arg8[%c0_33, %c0_34] : memref<8x128xf32, #tpu.memory_space<vmem>>, vector<8x128xf32>
    %cst_35 = arith.constant 0.000000e+00 : f32
    %52 = vector.broadcast %cst_35 : f32 to vector<8x128xf32>
    %53 = arith.select %8, %50, %52 : vector<8x128xi1>, vector<8x128xf32>
    %54 = arith.addf %51, %53 : vector<8x128xf32>
    %c0_36 = arith.constant 0 : index
    %c0_37 = arith.constant 0 : index
    %55 = vector.load %arg8[%c0_36, %c0_37] : memref<8x128xf32, #tpu.memory_space<vmem>>, vector<8x128xf32>
    tpu.vector_store %arg8[%c0_36, %c0_37], %54 {strides = array<i32>} : memref<8x128xf32, #tpu.memory_space<vmem>>, vector<8x128xf32>,
    %c0_i32_38 = arith.constant 0 : i32
    %56 = arith.cmpi eq, %arg1, %c0_i32_38 : i32
    %57 = arith.extui %56 : i1 to i32
    %c0_i32_39 = arith.constant 0 : i32
    %58 = arith.cmpi ne, %57, %c0_i32_39 : i32
    scf.if %58 {
      %c0_40 = arith.constant 0 : index
      %c0_41 = arith.constant 0 : index
      %59 = vector.load %arg8[%c0_40, %c0_41] : memref<8x128xf32, #tpu.memory_space<vmem>>, vector<8x128xf32>
      %60 = vector.shape_cast %59 : vector<8x128xf32> to vector<1x8x128xf32>
      %cst_42 = arith.constant dense<0.000000e+00> : vector<1xf32>
      %61 = vector.multi_reduction <add>, %60, %cst_42 [1, 2] : vector<1x8x128xf32> to vector<1xf32>
      %62 = vector.shape_cast %61 : vector<1xf32> to vector<1x1x1xf32>
      %63 = vector.extract %62[0, 0, 0] : f32 from vector<1x1x1xf32>
      %64 = vector.broadcast %63 : f32 to vector<1x1xf32>
      %c0_43 = arith.constant 0 : index
      %c0_44 = arith.constant 0 : index
      %c0_45 = arith.constant 0 : index
      %65 = vector.load %arg7[%c0_43, %c0_44, %c0_45] : memref<1x1x1xf32, #tpu.memory_space<vmem>>, vector<1x1x1xf32>
      %66 = vector.shape_cast %65 : vector<1x1x1xf32> to vector<1x1xf32>
      %67 = vector.shape_cast %64 : vector<1x1xf32> to vector<1x1x1xf32>
      tpu.vector_store %arg7[%c0_43, %c0_44, %c0_45], %67 {strides = array<i32>} : memref<1x1x1xf32, #tpu.memory_space<vmem>>, vector<1x1x1xf32>,
    } else {
    }
    return
  }
  func.func @transform_0(%arg0: i32, %arg1: i32) -> (i32, i32, i32, i32) {
    %c0_i32 = arith.constant 0 : i32
    %c0_i32_0 = arith.constant 0 : i32
    %c0_i32_1 = arith.constant 0 : i32
    return %arg0, %c0_i32, %arg1, %c0_i32_0 : i32, i32, i32, i32
  }
  func.func @transform_1(%arg0: i32, %arg1: i32) -> (i32, i32, i32) {
    %c0_i32 = arith.constant 0 : i32
    %c0_i32_0 = arith.constant 0 : i32
    return %arg0, %arg1, %c0_i32 : i32, i32, i32
  }
  func.func @transform_2(%arg0: i32, %arg1: i32) -> (i32, i32, i32) {
    %c0_i32 = arith.constant 0 : i32
    %c0_i32_0 = arith.constant 0 : i32
    %c0_i32_1 = arith.constant 0 : i32
    return %arg0, %c0_i32, %c0_i32_0 : i32, i32, i32
  }
  func.func @transform_3(%arg0: i32, %arg1: i32) -> (i32, i32, i32) {
    %c0_i32 = arith.constant 0 : i32
    %c0_i32_0 = arith.constant 0 : i32
    %c0_i32_1 = arith.constant 0 : i32
    return %arg0, %c0_i32, %c0_i32_0 : i32, i32, i32
  }
  func.func @transform_4(%arg0: i32, %arg1: i32) -> (i32, i32, i32) {
    %c0_i32 = arith.constant 0 : i32
    %c0_i32_0 = arith.constant 0 : i32
    %c0_i32_1 = arith.constant 0 : i32
    return %arg0, %c0_i32, %c0_i32_0 : i32, i32, i32
  }
  func.func @transform_5(%arg0: i32, %arg1: i32) -> (i32, i32, i32) {
    %c0_i32 = arith.constant 0 : i32
    %c0_i32_0 = arith.constant 0 : i32
    %c0_i32_1 = arith.constant 0 : i32
    return %arg0, %c0_i32, %c0_i32_0 : i32, i32, i32
  }
}

</mosaic_0001>

<bundles_post_ra>
// kernel: tpu_custom_call.1
= control target key start
LH: loop header
LB: loop body
LE: loop exit
PB: predicated region body
PF: predicated region fallthrough
CT: control target
= control target key end

     0   :  { %11 = vsyncpa [#allocation4], 0  ;;  %s1117_s0 = inlined_call_operand.hbm [shape: f32[2,3,8,128], index: 0, kind: input, shape index: {}]   ;;  %s1118_s1 = inlined_call_operand.hbm [shape: s32[2,8,128], index: 1, kind: input, shape index: {}]   ;;  %s1119_s2 = inlined_call_operand.vmem [shape: f32[2,3,1], index: 2, kind: output, shape index: {0}]   ;;  %s1120_s3 = inlined_call_operand.vmem [shape: f32[2,3,1], index: 3, kind: output, shape index: {1}]   ;;  %s1121_s4 = inlined_call_operand.vmem [shape: f32[2,3,1], index: 4, kind: output, shape index: {2}]   ;;  %s1122_s5 = inlined_call_operand.vmem [shape: f32[2,1,1], index: 5, kind: output, shape index: {3}]  }
   0x1   :  { %13 = vsyncpa [#allocation4 + $0x1], 0 }
   0x2   :  { %14 = vsyncpa [#allocation6], 0 }
   0x3   :  { %16 = vsyncpa [#allocation6 + $0x1], 0  ;;  %s913_s18 = smov 0   ;;  %s915_s19 = smov 0  }
   0x4   :  { %s917_s20 = smov 0   ;;  %s919_s21 = smov 0  }
   0x5   :  { %s921_s22 = smov 0   ;;  %s923_s23 = smov 0  }
   0x6 LB: > { %s669_s24 = sadd.s32 4294967295, %s876_s23   ;;  %s34_s25 = sadd.s32 1, %s872_s22  ;;  %s876_s23 = sphi %s923_s23, %s22_s23   ;;  %s872_s22 = sphi %s921_s22, %s1133_s22   ;;  %s868_s21 = sphi %s919_s21, %s1132_s21   ;;  %s864_s20 = sphi %s917_s20, %s1131_s20   ;;  %s860_s19 = sphi %s915_s19, %s1130_s19   ;;  %s856_s18 = sphi %s913_s18, %s1129_s18  }
   0x7   : > { %p36_p0 = scmp.ge.s32.totalorder %s34_s25, 2  ;;  %s43_s26 = sadd.s32 1, %s864_s20 }
   0x8   : > { %p50_p1 = scmp.ne.s32.totalorder %s864_s20, %s860_s19  ;;  %p51_p2 = scmp.eq.s32.totalorder %s876_s23, 0 }
   0x9   : > { %s1135_s25 = smov (%p36_p0, %s34_s25), 0  ;;  %p56_p4 = scmp.ne.s32.totalorder %s860_s19, %s856_s18 }
   0xa   : > { %p52_p3 = por %p51_p2, %p50_p1  ;;  %s38_s27 = ssub.s32 %s872_s22, %s1135_s25 }
   0xb   : > { %p57_p5 = scmp.eq.s32.totalorder %s669_s24, 0  ;;  %p41_p6 = scmp.eq.s32.totalorder %s38_s27, 0 }
   0xc   : > { %p702_p8 = scmp.lt.s32.totalorder %s876_s23, 2  ;;  %s961_s30 = sand.u32 1, %s864_s20  }
   0xd   : > { %p952_p7 = por %p57_p5, %p56_p4  ;;  %s687_s6 = smul.u32 384, %s872_s22 }
   0xe   : > { %s958_s29 = scalar_select %p41_p6, %s864_s20, %s43_s26  }
   0xf   : > { %s1124_s28 = scalar_select %p952_p7, 1, 0 }
  0x10   : > { %s686_s7 = smul.u32 24, %s961_s30  ;;  %s968_s10 = scalar_lea.hbm %s1117_s0, %s687_s6 }
  0x11   : > { %p970_p9 = pnand %p702_p8, %p52_p3  ;;  %s213_s14 = scalar_lea.sflag [#allocation4], %s961_s30 }
  0x12   : > { %s216_s12 = scalar_lea.vmem [#allocation3], %s686_s7  ;;  %s762_s15 = scalar_lea.hbm %s968_s10, 384 }
  0x13   : > { %s224_s13 = sshll.u32 %s216_s12, 4  ;;  %p763_p10 = scmp.ne.s32.totalorder %s968_s10, %s762_s15  ;;  %s974_s13 = int_to_ptr.vmem [resolvable:$true] %s224_s13 }
  0x14   : > { %p764_p11 = pneg %p970_p9  ;;  %s767_s18 = scalar_lea.hbm %s1117_s0, 768 }
  0x15   : > { %p768_p0 = scmp.lt.u32.totalorder %s968_s10, %s1117_s0  ;;  %p769_p1 = scmp.lt.u32.totalorder %s767_s18, %s762_s15 }
  0x16   : > { %p765_p12 = pnand %p764_p11, %p763_p10  ;;  %p771_p3 = scmp.lt.u32.totalorder %s762_s15, %s968_s10 }
  0x17   : > { %p770_p2 = por %p769_p1, %p768_p0 }
  0x18   : > { %p766_p13 = pneg %p765_p12 }
  0x19   : > { %p772_p4 = por %p771_p3, %p770_p2 }
  0x1b   : > { %p773_p5 = pnand %p772_p4, %p766_p13 }
  0x1d   : > { %776 = shalt.err (!%p773_p5)
}
  0x1e   : > { %s777_s27 = scalar_lea.vmem %s974_s13, 384  ;;  %s878_s6 = smov [#allocation3]  }
  0x1f   : > { %p778_p6 = scmp.ne.s32.totalorder %s974_s13, %s777_s27  ;;  %s782_s7 = sshll.u32 %s878_s6, 4  ;;  %s783_s7 = int_to_ptr.vmem [resolvable:$false] %s782_s7 }
  0x20   : > { %s784_s8 = scalar_lea.vmem %s783_s7, 768  ;;  %p785_p12 = scmp.lt.s32.totalorder %s974_s13, %s783_s7 }
  0x21   : > { %p780_p8 = pnand %p778_p6, %p764_p11  ;;  %p786_p0 = scmp.lt.s32.totalorder %s784_s8, %s777_s27 }
  0x23   : > { %p781_p10 = pneg %p780_p8  ;;  %p787_p1 = por %p786_p0, %p785_p12 }
  0x25   : > { %p788_p2 = pnand %p787_p1, %p781_p10 }
  0x27   : > { %791 = shalt.err (!%p788_p2)
}
  0x28   : > { %s879_s9 = smov 128   ;;  %s880_s12 = smov 8  }
  0x29   : > { %698 = dma.hbm_to_vmem [thread:$0]  (!%p970_p9), %s968_s10, 384, %s974_s13, %s213_s14, %s879_s9, %s879_s9, %s880_s12  }
  0x2a   : > { %p676_p13 = scmp.ge.s32.totalorder %s876_s23, 1  ;;  %p251_p3 = scmp.lt.s32.totalorder %s876_s23, 3 }
  0x2b   : > { %s674_s15 = sshll.u32 %s961_s30, 3  ;;  %s675_s17 = sshll.u32 %s872_s22, 7 }
  0x2c   : > { %p1007_p4 = pnand %p676_p13, %p251_p3  ;;  %s238_s18 = scalar_lea.vmem [#allocation5], %s674_s15 }
  0x2d   : > { %s246_s24 = sshll.u32 %s238_s18, 4  ;;  %s1015_s6 = scalar_lea.hbm %s1118_s1, %s675_s17  ;;  %s247_s24 = int_to_ptr.vmem [resolvable:$true] %s246_s24 }
  0x2e   : > { %s1126_s16 = scalar_select %p1007_p4, 1, 0 }
  0x2f   : > { %s235_s10 = scalar_lea.sflag [#allocation6], %s961_s30  ;;  %s792_s13 = scalar_lea.hbm %s1015_s6, 128 }
  0x30   : > { %p793_p5 = scmp.ne.s32.totalorder %s1015_s6, %s792_s13  ;;  %s797_s8 = scalar_lea.hbm %s1118_s1, 256 }
  0x31   : > { %p798_p10 = scmp.lt.u32.totalorder %s1015_s6, %s1118_s1  ;;  %p799_p12 = scmp.lt.u32.totalorder %s797_s8, %s792_s13 }
  0x32   : > { %p795_p6 = pnand %p793_p5, %p764_p11  ;;  %p801_p1 = scmp.lt.u32.totalorder %s792_s13, %s1015_s6 }
  0x33   : > { %p800_p0 = por %p799_p12, %p798_p10 }
  0x34   : > { %p796_p8 = pneg %p795_p6 }
  0x35   : > { %p802_p2 = por %p801_p1, %p800_p0 }
  0x37   : > { %p803_p13 = pnand %p802_p2, %p796_p8 }
  0x39   : > { %806 = shalt.err (!%p803_p13)
}
  0x3a   : > { %s807_s30 = scalar_lea.vmem %s247_s24, 128  ;;  %s881_s15 = smov [#allocation5]  }
  0x3b   : > { %p808_p3 = scmp.ne.s32.totalorder %s247_s24, %s807_s30  ;;  %s812_s17 = sshll.u32 %s881_s15, 4  ;;  %s813_s17 = int_to_ptr.vmem [resolvable:$false] %s812_s17 }
  0x3c   : > { %s814_s18 = scalar_lea.vmem %s813_s17, 256  ;;  %p815_p7 = scmp.lt.s32.totalorder %s247_s24, %s813_s17 }
  0x3d   : > { %p810_p5 = pnand %p808_p3, %p764_p11  ;;  %p816_p4 = scmp.lt.s32.totalorder %s814_s18, %s807_s30 }
  0x3f   : > { %p811_p6 = pneg %p810_p5  ;;  %p817_p10 = por %p816_p4, %p815_p7 }
  0x41   : > { %p818_p12 = pnand %p817_p10, %p811_p6 }
  0x43   : > { %821 = shalt.err (!%p818_p12)
}
  0x44   : > { %701 = dma.hbm_to_vmem [thread:$0]  (!%p970_p9), %s1015_s6, 128, %s247_s24, %s235_s10  }
  0x45   : > { %p1127_p8 = scmp.ne.s32.totalorder %s1126_s16, 0 }
  0x46   : > { %s257_s26 = sand.u32 (!%p1127_p8), 1, %s860_s19   ;;  %p1128_p11 = scmp.ne.s32.totalorder (!%p1127_p8), %s1124_s28, 0 }
  0x47   : > { %255 = sbr.rel (%p1127_p8) target bundleno = 330 (0x14a), region = 28  ;;  %s258_s13 = scalar_lea.sflag (!%p1127_p8), [#allocation4], %s257_s26 }
  0x48   : > { %s688_s27 = smul.u32 (!%p1127_p8), 24, %s257_s26 }
  0x4a   : > { %s261_s14 = scalar_lea.vmem (!%p1127_p8), [#allocation3], %s688_s27 }
  0x4e   : > { %847 = dma.done.wait (%p1128_p11), %s258_s13, 384  }
  0x4f   : > { %849 = vsyncadd (%p1128_p11), %s258_s13, 4294966912  ;;  %s677_s7 = sshll.u32 %s257_s26, 3  ;;  %s267_s8 = scalar_lea.sflag [#allocation6], %s257_s26 }
  0x50   : > { %s270_s11 = scalar_lea.vmem [#allocation5], %s677_s7 }
  0x51   : > { %851 = dma.done.wait (%p1128_p11), %s267_s8, 128  }
  0x52   : > { %853 = vsyncadd (%p1128_p11), %s267_s8, 4294967168  ;;  %v336_v0 = vld [vmem:[%s261_s14] sm:$0xff]  ;;  %v337_v1 = vld [vmem:[%s261_s14 + $0x8] sm:$0xff]  ;;  %v882_v8 = vmov 0.0   ;;  %vm411_vm3 = vcmask 1041409   ;;  %vm413_vm4 = vcmask 1042434  }
  0x53   : > { %v338_v2 = vld [vmem:[%s261_s14 + $0x10] sm:$0xff]  ;;  %v447_v4 = vmax.f32 %v336_v0, %v337_v1  ;;  %v371_v5 = vrot.slane %v336_v0, 4  ;;  %v377_v6 = vrot.slane %v337_v1, 4  ;;  %vm416_vm5 = vcmask 1042432   ;;  %p312_p7 = scmp.lt.s32.totalorder %s868_s21, 1 }
  0x54   : > { %v1048_v3 = vld [vmem:[%s270_s11] sm:$0xff]  ;;  %v383_v7 = vrot.slane %v338_v2, 4  ;;  %vm331_vm7 = vcmask 2048   ;;  %vm481_vm8 = vcmask 0  }
  0x55   : > { %vm341_vm0 = vcmp.eq.s32.totalorder %v1048_v3, 0  ;;  %vm342_vm1 = vcmp.eq.s32.totalorder %v1048_v3, 1  ;;  %vm343_vm2 = vcmp.eq.s32.totalorder %v1048_v3, 2  ;;  %v1055_v11 = vmax.f32 %v447_v4, %v338_v2  ;;  %s1137_s21 = smov (!%p312_p7, %s868_s21), 1 }
  0x56   : > { %v681_v9 = vsel %vm341_vm0, 1.0, %v882_v8  ;;  %v682_v10 = vsel %vm342_vm1, 1.0, %v882_v8  ;;  %v372_v19 = vadd.f32 %v371_v5, %v336_v0  ;;  %v683_v20 = vsel %vm343_vm2, 1.0, %v882_v8  ;;  %s678_s28 = sshll.u32 %s1137_s21, 2  ;;  %s326_s27 = scalar_lea.vmem %s1122_s5, %s1137_s21 }
  0x57   : > { %v351_v12 = vmul.f32 %v682_v10, %v337_v1  ;;  %v389_v13 = vrot.slane %v681_v9, 4  ;;  %v395_v14 = vrot.slane %v682_v10, 4  ;;  %v350_v15 = vmul.f32 %v681_v9, %v336_v0  ;;  %s319_s6 = scalar_lea.vmem %s1120_s3, %s678_s28  ;;  %s323_s12 = scalar_lea.vmem %s1121_s4, %s678_s28 }
  0x58   : > { %v449_v16 = vsub.f32 %v336_v0, %v1055_v11  ;;  %v450_v17 = vsub.f32 %v337_v1, %v1055_v11  ;;  %v451_v18 = vsub.f32 %v338_v2, %v1055_v11  ;;  %v378_v27 = vadd.f32 %v377_v6, %v337_v1  ;;  %333 = vst.msk [vmem:[%s319_s6] sm:$0x7] %vm331_vm7, %v882_v8  ;;  %s315_s17 = scalar_lea.vmem %s1119_s2, %s678_s28 }
  0x59   : > { %v359_v21 = vrot.slane %v351_v12, 4  ;;  %v390_v22 = vadd.f32 %v681_v9, %v389_v13  ;;  %v396_v23 = vadd.f32 %v682_v10, %v395_v14  ;;  %v373_v28 = vrot.slane %v372_v19, 2  ;;  %334 = vst.msk [vmem:[%s323_s12] sm:$0x7] %vm331_vm7, %v882_v8  ;;  %332 = vst.msk [vmem:[%s315_s17] sm:$0x7] %vm331_vm7, %v882_v8 }
  0x5a   : > { %v452_v24 = vmul.f32 1.442695, %v449_v16  ;;  %v454_v25 = vmul.f32 1.442695, %v450_v17  ;;  %v456_v26 = vmul.f32 1.442695, %v451_v18  ;;  %v384_v29 = vadd.f32 %v383_v7, %v338_v2 }
  0x5b   : > { %v391_v30 = vrot.slane %v390_v22, 2  ;;  %v397_v31 = vrot.slane %v396_v23, 2  ;;  %v353_v32 = vrot.slane %v350_v15, 4  ;;  %v379_v33 = vrot.slane %v378_v27, 2 }
  0x5c   : > { %754 = vpow2.f32 %v452_v24  ;;  %v401_v34 = vrot.slane %v683_v20, 4  ;;  %v374_v35 = vadd.f32 %v373_v28, %v372_v19  ;;  %v385_v36 = vrot.slane %v384_v29, 2 }
  0x5d   : > { %756 = vpow2.f32 %v454_v25  ;;  %v392_v37 = vadd.f32 %v391_v30, %v390_v22  ;;  %v380_v38 = vadd.f32 %v379_v33, %v378_v27  ;;  %v398_v39 = vadd.f32 %v397_v31, %v396_v23 }
  0x5e   : > { %758 = vpow2.f32 %v456_v26  ;;  %v402_v40 = vadd.f32 %v683_v20, %v401_v34  ;;  %v375_v41 = vrot.slane %v374_v35, 1  ;;  %v386_v42 = vadd.f32 %v385_v36, %v384_v29 }
  0x5f   : > { %v393_v43 = vrot.slane %v392_v37, 1  ;;  %v352_v44 = vmul.f32 %v683_v20, %v338_v2  ;;  %v381_v45 = vrot.slane %v380_v38, 1  ;;  %v399_v46 = vrot.slane %v398_v39, 1 }
  0x60   : > { %v403_v47 = vrot.slane %v402_v40, 2  ;;  %v376_v48 = vadd.f32 %v375_v41, %v374_v35  ;;  %v387_v49 = vrot.slane %v386_v42, 1  ;;  %v354_v55 = vadd.f32 %v353_v32, %v350_v15  ;;  %v435_v31 = vld [vmem:[%s323_s12] sm:$0x7] }
  0x61   : > { %v394_v50 = vadd.f32 %v393_v43, %v392_v37  ;;  %v382_v51 = vadd.f32 %v381_v45, %v380_v38  ;;  %v400_v52 = vadd.f32 %v399_v46, %v398_v39  ;;  %v360_v56 = vadd.f32 %v359_v21, %v351_v12  ;;  %v407_v36 = vld [vmem:[%s315_s17] sm:$0x7] }
  0x62   : > { %v404_v53 = vadd.f32 %v403_v47, %v402_v40  ;;  %v388_v54 = vadd.f32 %v387_v49, %v386_v42  ;;  %v365_v57 = vrot.slane %v352_v44, 4  ;;  %v355_v4 = vrot.slane %v354_v55, 2 }
  0x63   : > { %v427_v58 = vsel %vm411_vm3, %v382_v51, %v376_v48  ;;  %v439_v61 = vsel %vm411_vm3, %v400_v52, %v394_v50  ;;  %v361_v5 = vrot.slane %v360_v56, 2  ;;  %vm340_vm6 = vcmp.ge.s32.totalorder %v1048_v3, 0  ;;  %v423_v3 = vld [vmem:[%s319_s6] sm:$0x7] }
  0x64   : > { %v405_v59 = vrot.slane %v404_v53, 1  ;;  %v428_v60 = vsel %vm413_vm4, %v388_v54, %v427_v58  ;;  %v366_v1 = vadd.f32 %v365_v57, %v352_v44  ;;  %v356_v14 = vadd.f32 %v355_v4, %v354_v55 }
  0x65   : > { %v430_v63 = vsel %vm416_vm5, %v428_v60, 0.0  ;;  %v362_v15 = vadd.f32 %v361_v5, %v360_v56 }
  0x66   : > { %v755_v62 = vpop.eup %754  ;;  %v406_v0 = vadd.f32 %v405_v59, %v404_v53  ;;  %431 = vadd.xlane.f32.xlu1 %v430_v63  ;;  %v367_v13 = vrot.slane %v366_v1, 2  ;;  %v357_v17 = vrot.slane %v356_v14, 1 }
  0x67   : > { %v757_v2 = vpop.eup %756  ;;  %v363_v18 = vrot.slane %v362_v15, 1 }
  0x68   : > { %v759_v6 = vpop.eup %758  ;;  %v458_v7 = vadd.f32 %v757_v2, %v755_v62  ;;  %v440_v9 = vsel %vm413_vm4, %v406_v0, %v439_v61  ;;  %v368_v16 = vadd.f32 %v367_v13, %v366_v1  ;;  %v358_v20 = vadd.f32 %v357_v17, %v356_v14 }
  0x69   : > { %v442_v10 = vsel %vm416_vm5, %v440_v9, 0.0  ;;  %v364_v21 = vadd.f32 %v363_v18, %v362_v15 }
  0x6a   : > { %v459_v12 = vadd.f32 %v759_v6, %v458_v7  ;;  %443 = vadd.xlane.f32.xlu1 %v442_v10  ;;  %v369_v19 = vrot.slane %v368_v16, 1 }
  0x6b   : > { %v412_v25 = vsel %vm411_vm3, %v364_v21, %v358_v20 }
  0x6c   : > { %760 = vlog2.f32 %v459_v12  ;;  %v370_v23 = vadd.f32 %v369_v19, %v368_v16 }
  0x6e   : > { %v414_v27 = vsel %vm413_vm4, %v370_v23, %v412_v25 }
  0x6f   : > { %v417_v29 = vsel %vm416_vm5, %v414_v27, 0.0 }
  0x76   : > { %v761_v22 = vpop.eup %760 }
  0x77   : > { %v461_v24 = vmul.f32 0.6931472, %v761_v22 }
  0x79   : > { %v462_v26 = vadd.f32 %v461_v24, %v1055_v11 }
  0x7b   : > { %v464_v28 = vsel %vm340_vm6, %v462_v26, 0.0 }
  0x7c   : > { %471 = vadd.xlane.f32.xlu0 %v464_v28 }
  0x80   : > { %418 = vadd.xlane.f32.xlu0 %v417_v29 }
  0xf3   : > { %v432_v11 = vpop.xlane.xlu1 %431 }
  0xf4   : > { %v433_v30 = vadd.f32 %v432_v11, %v423_v3 }
  0xf6   : > { %434 = vst.msk [vmem:[%s319_s6] sm:$0x7] %vm331_vm7, %v433_v30 }
  0xf7   : > { %v444_v32 = vpop.xlane.xlu1 %443 }
  0xf8   : > { %v445_v33 = vadd.f32 %v444_v32, %v435_v31 }
  0xfa   : > { %446 = vst.msk [vmem:[%s323_s12] sm:$0x7] %vm331_vm7, %v445_v33 }
 0x109   : > { %v472_v34 = vpop.xlane.xlu0 %471 }
 0x10a   : > { %v473_v35 = vrot.slane %v472_v34, 4 }
 0x10c   : > { %v474_v37 = vadd.f32 %v473_v35, %v472_v34 }
 0x10d   : > { %v419_v38 = vpop.xlane.xlu0 %418 }
 0x10e   : > { %v475_v39 = vrot.slane %v474_v37, 2  ;;  %v420_v40 = vadd.f32 %v419_v38, %v407_v36 }
 0x110   : > { %v476_v41 = vadd.f32 %v475_v39, %v474_v37  ;;  %422 = vst.msk [vmem:[%s315_s17] sm:$0x7] %vm331_vm7, %v420_v40 }
 0x112   : > { %v477_v8 = vrot.slane %v476_v41, 1 }
 0x114   : > { %v478_v42 = vadd.f32 %v477_v8, %v476_v41 }
 0x116   : > { %689 = vpush %v478_v42 }
 0x147   : > { %s690_s13 = spop %689 }
 0x148   : > { %v480_v43 = vstv %s690_s13 }
 0x149   : > { %482 = vst.msk [vmem:[%s326_s27] sm:$0x1] %vm481_vm8, %v480_v43 }
 0x14a PF: > { %s22_s23 = sadd.s32 1, %s876_s23   ;;  %s1129_s18 = smov %s860_s19 }
 0x14b   : > { %p19_p9 = scmp.ge.s32.totalorder %s22_s23, 4   ;;  %s1130_s19 = smov %s864_s20 }
 0x14c   : > { %s1131_s20 = smov %s958_s29  ;;  %s1132_s21 = smov %s872_s22 }
 0x14d   : > { %s1133_s22 = smov %s1135_s25  ;;  %21 = sbr.rel (!%p19_p9) target bundleno = 6 (0x6), region = 125 }
 0x154   :  { %542 = vsyncpa [#allocation4], 1 }
 0x155   :  { %544 = vsyncpa [#allocation4 + $0x1], 1 }
 0x156   :  { %545 = vsyncpa [#allocation6], 1 }
 0x157   :  { %547 = vsyncpa [#allocation6 + $0x1], 1 }

</bundles_post_ra>
